<compile_context>
chip_gen: v7x
topology: tpu7x:2x2x1
jax: 0.10.0
libtpu: 0.0.40
codegen_flags: <defaults>
</compile_context>

<pallas_src>
import functools
import math

import jax
import jax.numpy as jnp
from jax.experimental import pallas as pl
from jax.experimental.pallas import tpu as pltpu


def cross_attention_kernel(x_ref, y_ref, wq_ref, bq_ref, wk_ref, bk_ref,
                           wv_ref, bv_ref, wo_ref, bo_ref, o_ref,
                           *, n_heads, d_head, compute_dtype, exact_div):
    """One (batch, query-tile) grid step.

    x_ref : (1, tq, D)       y_ref : (1, Sk, Dc)
    wq_ref: (D,  D)  [scale pre-folded]   bq_ref: (1, D) f32 [scale pre-folded]
    wk_ref: (Dc, D)          bk_ref: (1, D) f32
    wv_ref: (Dc, D)          bv_ref: (1, D) f32
    wo_ref: (D,  D)          bo_ref: (1, D) f32     o_ref: (1, tq, D)
    """
    tq = x_ref.shape[1]
    D = x_ref.shape[2]

    x = x_ref[0].astype(compute_dtype)                         # (tq, D)
    y = y_ref[0].astype(compute_dtype)                         # (Sk, Dc)

    # ---- projections: three fat MXU matmuls, bf16 operands, f32 accumulate ----
    # (1/sqrt(d_head) is already folded into wq/bq wrapper-side.)
    q = jnp.dot(x, wq_ref[...], preferred_element_type=jnp.float32) + bq_ref[...]
    k = jnp.dot(y, wk_ref[...], preferred_element_type=jnp.float32) + bk_ref[...]
    v = jnp.dot(y, wv_ref[...], preferred_element_type=jnp.float32) + bv_ref[...]

    # ---- split heads once: (S, D) -> (H, S, dh), head dim leading ----
    qh = q.reshape(tq, n_heads, d_head).swapaxes(0, 1).astype(compute_dtype)   # (H, tq, dh)
    kh = k.reshape(-1, n_heads, d_head).swapaxes(0, 1).astype(compute_dtype)   # (H, Sk, dh)
    vh = v.reshape(-1, n_heads, d_head).swapaxes(0, 1).astype(compute_dtype)   # (H, Sk, dh)

    # ---- attention scores for all heads in one batched contraction ----
    att = jnp.einsum('hqd,hkd->hqk', qh, kh,
                     preferred_element_type=jnp.float32)                       # (H, tq, Sk)

    # ---- softmax over keys, kept in f32 ----
    m = jnp.max(att, axis=-1, keepdims=True)
    e = jnp.exp(att - m)
    denom = jnp.sum(e, axis=-1, keepdims=True)
    if exact_div:
        p = e / denom                                      # bit-faithful F.softmax
    else:
        p = e * pl.reciprocal(denom, approx=True)          # EUP slot, ~free
    p = p.astype(compute_dtype)

    # ---- weighted sum of values, all heads batched ----
    outh = jnp.einsum('hqk,hkd->hqd', p, vh,
                      preferred_element_type=jnp.float32)                      # (H, tq, dh)

    # ---- merge heads back to (tq, D): single K=D out-projection matmul ----
    merged = outh.swapaxes(0, 1).reshape(tq, D).astype(compute_dtype)          # (tq, D)
    acc = jnp.dot(merged, wo_ref[...], preferred_element_type=jnp.float32)

    o_ref[0] = (acc + bo_ref[...]).astype(o_ref.dtype)


def cross_attention(x, y, wq, bq, wk, bk, wv, bv, wo, bo, *, n_heads,
                    tq=None, use_bf16=True, approx_softmax_recip=True):
    B, Sq, D = x.shape
    _, Sk, Dc = y.shape
    d_head = D // n_heads

    # Query-tile size: full extent for small Sq, else a multiple of 8 (sublane).
    if tq is None:
        tq = Sq if Sq <= 128 else 128
    assert Sq % tq == 0 and (tq == Sq or tq % 8 == 0), "bad query tile size"

    # Fold the attention scale into the query projection (zero in-kernel cost).
    scale = 1.0 / math.sqrt(d_head)
    compute_dtype = jnp.bfloat16 if use_bf16 else jnp.float32

    wq_s = (wq * scale).astype(compute_dtype)
    bq_s = (bq * scale).astype(jnp.float32)
    wk_c = wk.astype(compute_dtype)
    wv_c = wv.astype(compute_dtype)
    wo_c = wo.astype(compute_dtype)
    bk_c = bk.astype(jnp.float32)
    bv_c = bv.astype(jnp.float32)
    bo_c = bo.astype(jnp.float32)

    kernel = functools.partial(cross_attention_kernel,
                               n_heads=n_heads, d_head=d_head,
                               compute_dtype=compute_dtype,
                               exact_div=not approx_softmax_recip)

    return pl.pallas_call(
        kernel,
        out_shape=jax.ShapeDtypeStruct((B, Sq, D), x.dtype),
        grid=(B, Sq // tq),
        in_specs=[
            pl.BlockSpec((1, tq, D), lambda b, i: (b, i, 0)),     # x tile
            pl.BlockSpec((1, Sk, Dc), lambda b, i: (b, 0, 0)),    # y (full context)
            pl.BlockSpec((D, D), lambda b, i: (0, 0)),            # W_q (scaled)
            pl.BlockSpec((1, D), lambda b, i: (0, 0)),            # b_q (scaled)
            pl.BlockSpec((Dc, D), lambda b, i: (0, 0)),           # W_k
            pl.BlockSpec((1, D), lambda b, i: (0, 0)),            # b_k
            pl.BlockSpec((Dc, D), lambda b, i: (0, 0)),           # W_v
            pl.BlockSpec((1, D), lambda b, i: (0, 0)),            # b_v
            pl.BlockSpec((D, D), lambda b, i: (0, 0)),            # W_out
            pl.BlockSpec((1, D), lambda b, i: (0, 0)),            # b_out
        ],
        out_specs=pl.BlockSpec((1, tq, D), lambda b, i: (b, i, 0)),
        compiler_params=pltpu.CompilerParams(
            dimension_semantics=("parallel", "parallel"),   # batch & query tiles independent
            vmem_limit_bytes=48 * 1024 * 1024),              # > v5e 16MiB default, < v7x 64MiB
    )(x, y, wq_s, bq_s, wk_c, bk_c, wv_c, bv_c, wo_c, bo_c)


def cross_attention_ref(x, y, wq, bq, wk, bk, wv, bv, wo, bo, *, n_heads):
    """Plain-JAX reference mirroring the PyTorch CrossAttention.forward (f32)."""
    B, Sq, D = x.shape
    dh = D // n_heads
    q = x @ wq + bq[0]
    k = y @ wk + bk[0]
    v = y @ wv + bv[0]
    q = q.reshape(B, Sq, n_heads, dh).transpose(0, 2, 1, 3)
    k = k.reshape(B, -1, n_heads, dh).transpose(0, 2, 1, 3)
    v = v.reshape(B, -1, n_heads, dh).transpose(0, 2, 1, 3)
    att = q @ jnp.swapaxes(k, -1, -2)
    att = att / math.sqrt(dh)
    att = jax.nn.softmax(att, axis=-1)
    out = att @ v
    out = out.transpose(0, 2, 1, 3).reshape(B, Sq, D)
    return out @ wo + bo[0]


if __name__ == "__main__":
    # Small, module-consistent shapes:
    #   batch=2, query seq=8, context seq=16, d_embed=32, d_cross=64, heads=4
    B, Sq, Sk, D, Dc, H = 2, 8, 16, 32, 64, 4

    key = jax.random.PRNGKey(0)
    kx, ky, k1, k2, k3, k4, k5, k6, k7, k8 = jax.random.split(key, 10)

    x = jax.random.normal(kx, (B, Sq, D), dtype=jnp.float32)
    y = jax.random.normal(ky, (B, Sk, Dc), dtype=jnp.float32)

    # PyTorch-style init: uniform(-1/sqrt(fan_in), 1/sqrt(fan_in)).
    bnd_e = 1.0 / math.sqrt(D)      # query / out_proj (fan_in = d_embed)
    bnd_c = 1.0 / math.sqrt(Dc)     # key / value     (fan_in = d_cross)
    wq = jax.random.uniform(k1, (D, D), jnp.float32, -bnd_e, bnd_e)
    bq = jax.random.uniform(k2, (1, D), jnp.float32, -bnd_e, bnd_e)
    wk = jax.random.uniform(k3, (Dc, D), jnp.float32, -bnd_c, bnd_c)
    bk = jax.random.uniform(k4, (1, D), jnp.float32, -bnd_c, bnd_c)
    wv = jax.random.uniform(k5, (Dc, D), jnp.float32, -bnd_c, bnd_c)
    bv = jax.random.uniform(k6, (1, D), jnp.float32, -bnd_c, bnd_c)
    wo = jax.random.uniform(k7, (D, D), jnp.float32, -bnd_e, bnd_e)
    bo = jax.random.uniform(k8, (1, D), jnp.float32, -bnd_e, bnd_e)

    ref = cross_attention_ref(x, y, wq, bq, wk, bk, wv, bv, wo, bo, n_heads=H)

    # Exact path (f32 MXU operands, exact softmax division): matches F.softmax
    # numerics tightly.
    out_f32 = cross_attention(x, y, wq, bq, wk, bk, wv, bv, wo, bo, n_heads=H,
                              use_bf16=False, approx_softmax_recip=False)
    out_f32 = jax.block_until_ready(out_f32)
    assert out_f32.shape == (B, Sq, D)
    assert jnp.allclose(out_f32, ref, atol=1e-4, rtol=1e-4), (
        "f32 path mismatch vs reference: max abs err = "
        f"{float(jnp.max(jnp.abs(out_f32 - ref))):.3e}")

    # Fast path (bf16 MXU operands + approx reciprocal): bf16-level tolerance.
    out_bf16 = cross_attention(x, y, wq, bq, wk, bk, wv, bv, wo, bo, n_heads=H)
    out_bf16 = jax.block_until_ready(out_bf16)
    assert out_bf16.shape == (B, Sq, D)
    assert jnp.allclose(out_bf16, ref, atol=3e-2, rtol=3e-2), (
        "bf16 path mismatch vs reference: max abs err = "
        f"{float(jnp.max(jnp.abs(out_bf16 - ref))):.3e}")

    print("KERNEL_OK")
</pallas_src>

<mosaic_0001>
module attributes {stable_mosaic.version = 11 : i64} {
  func.func @cross_attention_kernel(%arg0: i32, %arg1: i32, %arg2: memref<1x8x32xf32, #tpu.memory_space<vmem>>, %arg3: memref<1x16x64xf32, #tpu.memory_space<vmem>>, %arg4: memref<32x32xf32, #tpu.memory_space<vmem>>, %arg5: memref<1x32xf32, #tpu.memory_space<vmem>>, %arg6: memref<64x32xf32, #tpu.memory_space<vmem>>, %arg7: memref<1x32xf32, #tpu.memory_space<vmem>>, %arg8: memref<64x32xf32, #tpu.memory_space<vmem>>, %arg9: memref<1x32xf32, #tpu.memory_space<vmem>>, %arg10: memref<32x32xf32, #tpu.memory_space<vmem>>, %arg11: memref<1x32xf32, #tpu.memory_space<vmem>>, %arg12: memref<1x8x32xf32, #tpu.memory_space<vmem>>) attributes {dimension_semantics = [#tpu.dimension_semantics<parallel>, #tpu.dimension_semantics<parallel>], iteration_bounds = array<i64: 2, 1>, scalar_prefetch = 0 : i64, scratch_operands = 0 : i64, tpu.core_type = #tpu.core_type<tc>, window_params = [{transform_indices = @transform_0, window_bounds = array<i64: 1, 8, 32>}, {transform_indices = @transform_1, window_bounds = array<i64: 1, 16, 64>}, {pipeline_mode = #tpu.pipeline_mode<synchronous>, transform_indices = @transform_2, window_bounds = array<i64: 32, 32>}, {pipeline_mode = #tpu.pipeline_mode<synchronous>, transform_indices = @transform_3, window_bounds = array<i64: 1, 32>}, {pipeline_mode = #tpu.pipeline_mode<synchronous>, transform_indices = @transform_4, window_bounds = array<i64: 64, 32>}, {pipeline_mode = #tpu.pipeline_mode<synchronous>, transform_indices = @transform_5, window_bounds = array<i64: 1, 32>}, {pipeline_mode = #tpu.pipeline_mode<synchronous>, transform_indices = @transform_6, window_bounds = array<i64: 64, 32>}, {pipeline_mode = #tpu.pipeline_mode<synchronous>, transform_indices = @transform_7, window_bounds = array<i64: 1, 32>}, {pipeline_mode = #tpu.pipeline_mode<synchronous>, transform_indices = @transform_8, window_bounds = array<i64: 32, 32>}, {pipeline_mode = #tpu.pipeline_mode<synchronous>, transform_indices = @transform_9, window_bounds = array<i64: 1, 32>}, {transform_indices = @transform_10, window_bounds = array<i64: 1, 8, 32>}]} {
    %c0 = arith.constant 0 : index
    %c0_0 = arith.constant 0 : index
    %c0_1 = arith.constant 0 : index
    %0 = vector.load %arg2[%c0, %c0_0, %c0_1] : memref<1x8x32xf32, #tpu.memory_space<vmem>>, vector<1x8x32xf32>
    %1 = vector.shape_cast %0 : vector<1x8x32xf32> to vector<8x32xf32>
    %c0_2 = arith.constant 0 : index
    %c0_3 = arith.constant 0 : index
    %c0_4 = arith.constant 0 : index
    %2 = vector.load %arg3[%c0_2, %c0_3, %c0_4] : memref<1x16x64xf32, #tpu.memory_space<vmem>>, vector<1x16x64xf32>
    %3 = vector.shape_cast %2 : vector<1x16x64xf32> to vector<16x64xf32>
    %c0_5 = arith.constant 0 : index
    %c0_6 = arith.constant 0 : index
    %4 = vector.load %arg4[%c0_5, %c0_6] : memref<32x32xf32, #tpu.memory_space<vmem>>, vector<32x32xf32>
    %cst = arith.constant dense<0.000000e+00> : vector<8x32xf32>
    %5 = tpu.matmul %1, %4, %cst {dimension_numbers = #tpu.dot_dimension_numbers<[1], [0], [0], [1], [0, 0, 1, 1], [], []>} : vector<8x32xf32>, vector<32x32xf32>, vector<8x32xf32> -> vector<8x32xf32>
    %c0_7 = arith.constant 0 : index
    %c0_8 = arith.constant 0 : index
    %6 = vector.load %arg5[%c0_7, %c0_8] : memref<1x32xf32, #tpu.memory_space<vmem>>, vector<1x32xf32>
    %7 = vector.broadcast %6 : vector<1x32xf32> to vector<8x32xf32>
    %8 = arith.addf %5, %7 : vector<8x32xf32>
    %c0_9 = arith.constant 0 : index
    %c0_10 = arith.constant 0 : index
    %9 = vector.load %arg6[%c0_9, %c0_10] : memref<64x32xf32, #tpu.memory_space<vmem>>, vector<64x32xf32>
    %cst_11 = arith.constant dense<0.000000e+00> : vector<16x32xf32>
    %10 = tpu.matmul %3, %9, %cst_11 {dimension_numbers = #tpu.dot_dimension_numbers<[1], [0], [0], [1], [0, 0, 1, 1], [], []>} : vector<16x64xf32>, vector<64x32xf32>, vector<16x32xf32> -> vector<16x32xf32>
    %c0_12 = arith.constant 0 : index
    %c0_13 = arith.constant 0 : index
    %11 = vector.load %arg7[%c0_12, %c0_13] : memref<1x32xf32, #tpu.memory_space<vmem>>, vector<1x32xf32>
    %12 = vector.broadcast %11 : vector<1x32xf32> to vector<16x32xf32>
    %13 = arith.addf %10, %12 : vector<16x32xf32>
    %c0_14 = arith.constant 0 : index
    %c0_15 = arith.constant 0 : index
    %14 = vector.load %arg8[%c0_14, %c0_15] : memref<64x32xf32, #tpu.memory_space<vmem>>, vector<64x32xf32>
    %cst_16 = arith.constant dense<0.000000e+00> : vector<16x32xf32>
    %15 = tpu.matmul %3, %14, %cst_16 {dimension_numbers = #tpu.dot_dimension_numbers<[1], [0], [0], [1], [0, 0, 1, 1], [], []>} : vector<16x64xf32>, vector<64x32xf32>, vector<16x32xf32> -> vector<16x32xf32>
    %c0_17 = arith.constant 0 : index
    %c0_18 = arith.constant 0 : index
    %16 = vector.load %arg9[%c0_17, %c0_18] : memref<1x32xf32, #tpu.memory_space<vmem>>, vector<1x32xf32>
    %17 = vector.broadcast %16 : vector<1x32xf32> to vector<16x32xf32>
    %18 = arith.addf %15, %17 : vector<16x32xf32>
    %19 = vector.shape_cast %8 : vector<8x32xf32> to vector<8x4x8xf32>
    %20 = tpu.transpose %19, [1, 0, 2] : vector<8x4x8xf32> -> vector<4x8x8xf32>
    %21 = vector.shape_cast %13 : vector<16x32xf32> to vector<16x4x8xf32>
    %22 = tpu.transpose %21, [1, 0, 2] : vector<16x4x8xf32> -> vector<4x16x8xf32>
    %23 = vector.shape_cast %18 : vector<16x32xf32> to vector<16x4x8xf32>
    %24 = tpu.transpose %23, [1, 0, 2] : vector<16x4x8xf32> -> vector<4x16x8xf32>
    "tpu.trace_start"() <{level = 10 : i32, message = "hqd,hkd->hqk"}> : () -> ()
    %cst_19 = arith.constant dense<0.000000e+00> : vector<4x8x16xf32>
    %25 = tpu.matmul %20, %22, %cst_19 {dimension_numbers = #tpu.dot_dimension_numbers<[2], [2], [1], [1], [0, 0, 0, 1, 1, 1], [0], [0]>} : vector<4x8x8xf32>, vector<4x16x8xf32>, vector<4x8x16xf32> -> vector<4x8x16xf32>
    "tpu.trace_stop"() : () -> ()
    %cst_20 = arith.constant dense<0xFF800000> : vector<4x8xf32>
    %26 = vector.multi_reduction <maximumf>, %25, %cst_20 [2] : vector<4x8x16xf32> to vector<4x8xf32>
    %27 = vector.shape_cast %26 : vector<4x8xf32> to vector<4x8x1xf32>
    %28 = vector.broadcast %27 : vector<4x8x1xf32> to vector<4x8x16xf32>
    %29 = arith.subf %25, %28 : vector<4x8x16xf32>
    %30 = math.exp %29 : vector<4x8x16xf32>
    %cst_21 = arith.constant dense<0.000000e+00> : vector<4x8xf32>
    %31 = vector.multi_reduction <add>, %30, %cst_21 [2] : vector<4x8x16xf32> to vector<4x8xf32>
    %32 = vector.shape_cast %31 : vector<4x8xf32> to vector<4x8x1xf32>
    %33 = vector.broadcast %32 : vector<4x8x1xf32> to vector<4x8x16xf32>
    %34 = arith.divf %30, %33 : vector<4x8x16xf32>
    "tpu.trace_start"() <{level = 10 : i32, message = "hqk,hkd->hqd"}> : () -> ()
    %cst_22 = arith.constant dense<0.000000e+00> : vector<4x8x8xf32>
    %35 = tpu.matmul %34, %24, %cst_22 {dimension_numbers = #tpu.dot_dimension_numbers<[2], [1], [1], [2], [0, 0, 0, 1, 1, 2], [0], [0]>} : vector<4x8x16xf32>, vector<4x16x8xf32>, vector<4x8x8xf32> -> vector<4x8x8xf32>
    "tpu.trace_stop"() : () -> ()
    %36 = tpu.transpose %35, [1, 0, 2] : vector<4x8x8xf32> -> vector<8x4x8xf32>
    %37 = vector.shape_cast %36 : vector<8x4x8xf32> to vector<8x32xf32>
    %c0_23 = arith.constant 0 : index
    %c0_24 = arith.constant 0 : index
    %38 = vector.load %arg10[%c0_23, %c0_24] : memref<32x32xf32, #tpu.memory_space<vmem>>, vector<32x32xf32>
    %cst_25 = arith.constant dense<0.000000e+00> : vector<8x32xf32>
    %39 = tpu.matmul %37, %38, %cst_25 {dimension_numbers = #tpu.dot_dimension_numbers<[1], [0], [0], [1], [0, 0, 1, 1], [], []>} : vector<8x32xf32>, vector<32x32xf32>, vector<8x32xf32> -> vector<8x32xf32>
    %c0_26 = arith.constant 0 : index
    %c0_27 = arith.constant 0 : index
    %40 = vector.load %arg11[%c0_26, %c0_27] : memref<1x32xf32, #tpu.memory_space<vmem>>, vector<1x32xf32>
    %41 = vector.broadcast %40 : vector<1x32xf32> to vector<8x32xf32>
    %42 = arith.addf %39, %41 : vector<8x32xf32>
    %c0_28 = arith.constant 0 : index
    %c0_29 = arith.constant 0 : index
    %c0_30 = arith.constant 0 : index
    %43 = vector.load %arg12[%c0_28, %c0_29, %c0_30] : memref<1x8x32xf32, #tpu.memory_space<vmem>>, vector<1x8x32xf32>
    %44 = vector.shape_cast %43 : vector<1x8x32xf32> to vector<8x32xf32>
    %45 = vector.shape_cast %42 : vector<8x32xf32> to vector<1x8x32xf32>
    tpu.vector_store %arg12[%c0_28, %c0_29, %c0_30], %45 {strides = array<i32>} : memref<1x8x32xf32, #tpu.memory_space<vmem>>, vector<1x8x32xf32>,
    return
  }
  func.func @transform_0(%arg0: i32, %arg1: i32) -> (i32, i32, i32) {
    %c0_i32 = arith.constant 0 : i32
    %c0_i32_0 = arith.constant 0 : i32
    return %arg0, %arg1, %c0_i32 : i32, i32, i32
  }
  func.func @transform_1(%arg0: i32, %arg1: i32) -> (i32, i32, i32) {
    %c0_i32 = arith.constant 0 : i32
    %c0_i32_0 = arith.constant 0 : i32
    %c0_i32_1 = arith.constant 0 : i32
    return %arg0, %c0_i32, %c0_i32_0 : i32, i32, i32
  }
  func.func @transform_2(%arg0: i32, %arg1: i32) -> (i32, i32) {
    %c0_i32 = arith.constant 0 : i32
    %c0_i32_0 = arith.constant 0 : i32
    %c0_i32_1 = arith.constant 0 : i32
    return %c0_i32, %c0_i32_0 : i32, i32
  }
  func.func @transform_3(%arg0: i32, %arg1: i32) -> (i32, i32) {
    %c0_i32 = arith.constant 0 : i32
    %c0_i32_0 = arith.constant 0 : i32
    %c0_i32_1 = arith.constant 0 : i32
    return %c0_i32, %c0_i32_0 : i32, i32
  }
  func.func @transform_4(%arg0: i32, %arg1: i32) -> (i32, i32) {
    %c0_i32 = arith.constant 0 : i32
    %c0_i32_0 = arith.constant 0 : i32
    %c0_i32_1 = arith.constant 0 : i32
    return %c0_i32, %c0_i32_0 : i32, i32
  }
  func.func @transform_5(%arg0: i32, %arg1: i32) -> (i32, i32) {
    %c0_i32 = arith.constant 0 : i32
    %c0_i32_0 = arith.constant 0 : i32
    %c0_i32_1 = arith.constant 0 : i32
    return %c0_i32, %c0_i32_0 : i32, i32
  }
  func.func @transform_6(%arg0: i32, %arg1: i32) -> (i32, i32) {
    %c0_i32 = arith.constant 0 : i32
    %c0_i32_0 = arith.constant 0 : i32
    %c0_i32_1 = arith.constant 0 : i32
    return %c0_i32, %c0_i32_0 : i32, i32
  }
  func.func @transform_7(%arg0: i32, %arg1: i32) -> (i32, i32) {
    %c0_i32 = arith.constant 0 : i32
    %c0_i32_0 = arith.constant 0 : i32
    %c0_i32_1 = arith.constant 0 : i32
    return %c0_i32, %c0_i32_0 : i32, i32
  }
  func.func @transform_8(%arg0: i32, %arg1: i32) -> (i32, i32) {
    %c0_i32 = arith.constant 0 : i32
    %c0_i32_0 = arith.constant 0 : i32
    %c0_i32_1 = arith.constant 0 : i32
    return %c0_i32, %c0_i32_0 : i32, i32
  }
  func.func @transform_9(%arg0: i32, %arg1: i32) -> (i32, i32) {
    %c0_i32 = arith.constant 0 : i32
    %c0_i32_0 = arith.constant 0 : i32
    %c0_i32_1 = arith.constant 0 : i32
    return %c0_i32, %c0_i32_0 : i32, i32
  }
  func.func @transform_10(%arg0: i32, %arg1: i32) -> (i32, i32, i32) {
    %c0_i32 = arith.constant 0 : i32
    %c0_i32_0 = arith.constant 0 : i32
    return %arg0, %arg1, %c0_i32 : i32, i32, i32
  }
}

</mosaic_0001>

<bundles_post_ra>
// kernel: tpu_custom_call.1
= control target key start
LH: loop header
LB: loop body
LE: loop exit
PB: predicated region body
PF: predicated region fallthrough
CT: control target
= control target key end

     0   :  { %15 = vsyncpa [#allocation3], 0  ;;  %s3332_s0 = inlined_call_operand.vmem [shape: f32[2,8,32], index: 0, kind: input, shape index: {}]   ;;  %s3333_s1 = inlined_call_operand.vmem [shape: f32[2,16,64], index: 1, kind: input, shape index: {}]   ;;  %s3334_s2 = inlined_call_operand.vmem [shape: f32[32,32], index: 2, kind: input, shape index: {}]   ;;  %s3335_s3 = inlined_call_operand.vmem [shape: f32[1,32], index: 3, kind: input, shape index: {}]   ;;  %s3336_s4 = inlined_call_operand.vmem [shape: f32[64,32], index: 4, kind: input, shape index: {}]   ;;  %s3337_s5 = inlined_call_operand.vmem [shape: f32[1,32], index: 5, kind: input, shape index: {}]   ;;  %s3338_s6 = inlined_call_operand.vmem [shape: f32[64,32], index: 6, kind: input, shape index: {}]   ;;  %s3339_s7 = inlined_call_operand.vmem [shape: f32[1,32], index: 7, kind: input, shape index: {}]   ;;  %s3340_s8 = inlined_call_operand.vmem [shape: f32[32,32], index: 8, kind: input, shape index: {}]   ;;  %s3341_s9 = inlined_call_operand.vmem [shape: f32[1,32], index: 9, kind: input, shape index: {}]   ;;  %s3342_s10 = inlined_call_operand.hbm [shape: f32[2,8,32], index: 10, kind: output, shape index: {}]  }
   0x1   :  { %17 = vsyncpa [#allocation3 + $0x1], 0  ;;  %s2917_s13 = smov 0   ;;  %s2919_s14 = smov 0  }
   0x2   :  { %s2921_s15 = smov 0   ;;  %s2923_s16 = smov 0  }
   0x3   :  { %s2925_s17 = smov 0   ;;  %s2927_s18 = smov 0  }
   0x4 LB: > { %3345 = sst [smem:[#allocation5_spill]] %s2844_s17  ;;  %s2394_s19 = sadd.s32 4294967295, %s2848_s18   ;;  %s2848_s18 = sphi %s2927_s18, %s23_s18   ;;  %s2844_s17 = sphi %s2925_s17, %s3352_s17   ;;  %s2840_s16 = sphi %s2923_s16, %s3351_s16   ;;  %s2836_s15 = sphi %s2921_s15, %s3355_s15   ;;  %s2832_s14 = sphi %s2919_s14, %s3354_s14   ;;  %s2828_s13 = sphi %s2917_s13, %s3353_s13  }
   0x5   : > { %s2395_s20 = sadd.s32 4294967294, %s2848_s18   ;;  %s35_s21 = sadd.s32 1, %s2844_s17 }
   0x6   : > { %s266_s22 = sadd.s32 1, %s2836_s15  ;;  %p37_p0 = scmp.ge.s32.totalorder %s35_s21, 2 }
   0x7   : > { %p276_p1 = scmp.ne.s32.totalorder %s2836_s15, %s2832_s14  ;;  %p277_p2 = scmp.eq.s32.totalorder %s2394_s19, 1 }
   0x8   : > { %p282_p3 = scmp.ne.s32.totalorder %s2832_s14, %s2828_s13  ;;  %s3357_s21 = smov (%p37_p0, %s35_s21), 0 }
   0x9   : > { %3346 = sst [smem:[#allocation6_spill]] %s3357_s21  ;;  %p2957_p4 = por %p277_p2, %p276_p1 }
   0xa   : > { %p283_p5 = scmp.eq.s32.totalorder %s2395_s20, 1  ;;  %s261_s24 = ssub.s32 %s2844_s17, %s3357_s21 }
   0xb   : > { %p2398_p6 = scmp.ge.s32.totalorder %s2848_s18, 1  ;;  %p264_p7 = scmp.eq.s32.totalorder %s261_s24, 0 }
   0xc   : > { %p2964_p8 = por %p283_p5, %p282_p3  ;;  %p343_p9 = scmp.lt.s32.totalorder %s2848_s18, 3 }
   0xd   : > { %s2970_s26 = scalar_select %p264_p7, %s2836_s15, %s266_s22  }
   0xe   : > { %p344_p10 = pnand %p2398_p6, %p343_p9 }
   0xf   : > { %v488_v0 = vld [vmem:[%s3336_s4] sm:$0xff] (!%p344_p10)  ;;  %v489_v1 = vld [vmem:[%s3336_s4 + $0x8] sm:$0xff] (!%p344_p10)  ;;  %v490_v2 = vld [vmem:[%s3336_s4 + $0x10] sm:$0xff] (!%p344_p10)  ;;  %p388_p11 = scmp.lt.s32.totalorder (!%p344_p10), %s2840_s16, 1  ;;  %v2850_v5 = vmov (!%p344_p10), 0.0|0.0   ;;  %vm2851_vm0 = vmmov (!%p344_p10), 0   ;;  %v690_v46 = vlaneseq (!%p344_p10) }
  0x10   : > { %347 = sbr.rel (%p344_p10) target bundleno = 1519 (0x5ef), region = 60  ;;  %v2622_v3 = vpack.c.bf16 (!%p344_p10), %v489_v1, %v488_v0  ;;  %v491_v4 = vld [vmem:[%s3336_s4 + $0x18] sm:$0xff] (!%p344_p10)  ;;  %2616 = vmatprep.subr.bf16.mxu0 (!%p344_p10), %v2850_v5  ;;  %v492_v7 = vld [vmem:[%s3336_s4 + $0x20] sm:$0xff] (!%p344_p10)  ;;  %v493_v8 = vld [vmem:[%s3336_s4 + $0x28] sm:$0xff] (!%p344_p10)  ;;  %v2852_v10 = vmov (!%p344_p10), 0.0   ;;  %vm503_vm1 = vcmask (!%p344_p10), 523264  }
  0x11   : > { %v2626_v6 = vpack.c.bf16 (!%p344_p10), %v491_v4, %v490_v2  ;;  %v403_v9 = vld [vmem:[%s3334_s2] sm:$0xff] (!%p344_p10)  ;;  %2508 = vmatprep.mubr.msk.f32.mxu0 (!%p344_p10), %vm2851_vm0, %v2852_v10  ;;  %v404_v11 = vld [vmem:[%s3334_s2 + $0x8] sm:$0xff] (!%p344_p10)  ;;  %v405_v12 = vld [vmem:[%s3334_s2 + $0x10] sm:$0xff] (!%p344_p10)  ;;  %v2630_v15 = vpack.c.bf16 (!%p344_p10), %v493_v8, %v492_v7  ;;  %vm414_vm2 = vcmask (!%p344_p10), 261120   ;;  %s2853_s24 = smov (!%p344_p10), 112   ;;  %v691_v50 = vshrl.u32 (!%p344_p10), %v690_v46, 7 }
  0x12   : > { %2623 = vmatprep.subr.bf16.mxu1 (!%p344_p10), %v2622_v3  ;;  %v406_v13 = vld [vmem:[%s3334_s2 + $0x18] sm:$0xff] (!%p344_p10)  ;;  %v2617_v14 = vpack.c.bf16 (!%p344_p10), %v404_v11, %v403_v9  ;;  %v494_v16 = vld [vmem:[%s3336_s4 + $0x30] sm:$0xff] (!%p344_p10)  ;;  %v585_v23 = vld [vmem:[%s3338_s6] sm:$0xff] (!%p344_p10)  ;;  %v2856_v44 = vmov (!%p344_p10), 1983009808   ;;  %vm1405_vm3 = vcmask (!%p344_p10), 64512  }
  0x13   : > { %2625 = vmatpush3.bf16.msra.mxu1 (!%p344_p10), %v2622_v3  ;;  %v495_v17 = vld [vmem:[%s3336_s4 + $0x38] sm:$0xff] (!%p344_p10)  ;;  %v2620_v19 = vpack.c.bf16 (!%p344_p10), %v406_v13, %v405_v12  ;;  %v586_v24 = vld [vmem:[%s3338_s6 + $0x8] sm:$0xff] (!%p344_p10)  ;;  %v2405_v28 = vld [vmem:[%s3337_s5] ss:$0 sm:$0xff] (!%p344_p10)  ;;  %v688_v45 = vunpack.c.l.s4 (!%p344_p10), %v2856_v44  ;;  %v2857_v51 = vmov (!%p344_p10), 1934713408  }
  0x14   : > { %2627 = vmatprep.subr.bf16.mxu1 (!%p344_p10), %v2626_v6  ;;  %2618 = vmatpush3.bf16.msra.mxu0 (!%p344_p10), %v2617_v14  ;;  %v2634_v20 = vpack.c.bf16 (!%p344_p10), %v495_v17, %v494_v16  ;;  %v2638_v26 = vpack.c.bf16 (!%p344_p10), %v586_v24, %v585_v23  ;;  %v587_v29 = vld [vmem:[%s3338_s6 + $0x10] sm:$0xff] (!%p344_p10)  ;;  %v588_v30 = vld [vmem:[%s3338_s6 + $0x18] sm:$0xff] (!%p344_p10)  ;;  %v2403_v36 = vld [vmem:[%s3335_s3] ss:$0 sm:$0xff] (!%p344_p10)  ;;  %v720_v52 = vunpack.c.l.s4 (!%p344_p10), %v2857_v51  ;;  %vm1722_vm5 = vcmask (!%p344_p10), 130048   ;;  %s2859_s17 = smov (!%p344_p10), 8  }
  0x15   : > { %2619 = vmatprep.subr.bf16.mxu0 (!%p344_p10), %v2850_v5  ;;  %v2642_v31 = vpack.c.bf16 (!%p344_p10), %v588_v30, %v587_v29  ;;  %v589_v38 = vld [vmem:[%s3338_s6 + $0x20] sm:$0xff] (!%p344_p10)  ;;  %v590_v39 = vld [vmem:[%s3338_s6 + $0x28] sm:$0xff] (!%p344_p10)  ;;  %v591_v41 = vld [vmem:[%s3338_s6 + $0x30] sm:$0xff] (!%p344_p10)  ;;  %v689_v49 = vunpack.c.0.s8 (!%p344_p10), %v688_v45  ;;  %s2860_s27 = smov (!%p344_p10), 24   ;;  %vm2209_vm6 = vcmask (!%p344_p10), 195584   ;;  %s2442_s11 = sshll.u32 (!%p344_p10), %s2840_s16, 7 }
  0x16   : > { %v2646_v40 = vpack.c.bf16 (!%p344_p10), %v590_v39, %v589_v38  ;;  %v592_v42 = vld [vmem:[%s3338_s6 + $0x38] sm:$0xff] (!%p344_p10)  ;;  %v721_v58 = vunpack.c.0.s8 (!%p344_p10), %v720_v52  ;;  %vm3115_vm4 = vmpackc.low (!%p344_p10), %vm1405_vm3, %vm1405_vm3 }
  0x17   : > { %s389_s29 = scalar_select %p388_p11, %s2840_s16, 1  ;;  %2629 = vmatpush3.bf16.msra.mxu1 %v2626_v6  ;;  %v2650_v43 = vpack.c.bf16 %v592_v42, %v591_v41  ;;  %v3075_v55 = vsub.s32 %v689_v49, %v691_v50 }
  0x18   : > { %2631 = vmatprep.subr.bf16.mxu1 %v2630_v15  ;;  %2621 = vmatpush3.bf16.msra.mxu0 %v2620_v19  ;;  %v3079_v6 = vsub.s32 %v721_v58, %v691_v50  ;;  %s2861_s16 = smov [#allocation2]  }
  0x19   : > { %s2445_s28 = sshll.u32 %s389_s29, 4  ;;  %s2400_s30 = sshll.u32 %s389_s29, 3  ;;  %2639 = vmatprep.subr.bf16.mxu0 %v2638_v26 }
  0x1a   : > { %s399_s12 = scalar_lea.vmem %s3333_s1, %s2445_s28  ;;  %s394_s21 = scalar_lea.vmem %s3332_s0, %s2400_s30 }
  0x1b   : > { %v401_v18 = vld [vmem:[%s399_s12] sm:$0xff]  ;;  %2633 = vmatpush3.bf16.msra.mxu1 %v2630_v15  ;;  %v402_v22 = vld [vmem:[%s399_s12 + $0x8] sm:$0xff]  ;;  %s2855_s28 = smov 104   ;;  %s2858_s29 = smov 16  }
  0x1c   : > { %2527 = vmatprep.mubr.msk.f32.mxu1 %vm503_vm1, %v401_v18  ;;  %v400_v21 = vld [vmem:[%s394_s21] sm:$0xff]  ;;  %2635 = vmatprep.subr.bf16.mxu1 %v2634_v20  ;;  %s2854_s21 = smov 120   ;;  %s385_s30 = sand.u32 1, %s2832_s14  }
  0x1d   : > { %2509 = vmatmul.mubr.msk.f32.vlgmr.msra.gmra.mrb[0].mxu0 %vm414_vm2, %v400_v21 }
  0x1e   : > { %2546 = vmatprep.mubr.msk.f32.mxu0 %vm503_vm1, %v401_v18  ;;  %2641 = vmatpush3.bf16.msra.mxu0 %v2638_v26 }
  0x1f   : > { %2637 = vmatpush3.bf16.msra.mxu1 %v2634_v20  ;;  %2643 = vmatprep.subr.bf16.mxu0 %v2642_v31 }
  0x20   : > { %2654 = vmatprep.subr.bf16.mxu1 %v2850_v5 }
  0x22   : > { %2528 = vmatmul.mubr.msk.f32.vlgmr.msra.gmra.mrb[0].mxu1 %vm503_vm1, %v402_v22  ;;  %2645 = vmatpush3.bf16.msra.mxu0 %v2642_v31 }
  0x23   : > { %2553 = vmatprep.mubr.msk.f32.mxu1 %vm2851_vm0, %v2852_v10  ;;  %2647 = vmatprep.subr.bf16.mxu0 %v2646_v40 }
  0x26   : > { %2649 = vmatpush3.bf16.msra.mxu0 %v2646_v40 }
  0x27   : > { %2651 = vmatprep.subr.bf16.mxu0 %v2650_v43 }
  0x2a   : > { %2653 = vmatpush3.bf16.msra.mxu0 %v2650_v43 }
  0x2b   : > { %2658 = vmatprep.subr.bf16.mxu0 %v2850_v5 }
  0x2d   : > { %2547 = vmatmul.mubr.msk.f32.vlgmr.msra.gmra.mrb[2].mxu0 %vm503_vm1, %v402_v22 }
  0x2e   : > { %2560 = vmatprep.mubr.msk.f32.mxu0 %vm2851_vm0, %v2852_v10 }
  0xf0   : > { %v484_v25 = vpop.f32.mrb[0].mxu0 }
  0xf1   : > { %v2510_v27 = vpop.f32.mrb[1].mxu0  ;;  %v3051_v37 = vadd.f32 %v2403_v36, %v484_v25 }
  0xf5   : > { %v2529_v32 = vpop.f32.mrb[0].mxu1 }
  0xf6   : > { %v582_v33 = vadd.f32 %v2529_v32, %v2405_v28  ;;  %v576_v34 = vpop.f32.mrb[1].mxu1 }
  0xf7   : > { %v577_v35 = vadd.f32 %v2405_v28, %v576_v34 }
  0xf8   : > { %831 = vrot.lane.b32.xlu1 %v582_v33, %s2853_s24  ;;  %825 = vrot.lane.b32.xlu0 %v582_v33, %s2854_s21 }
  0xfc   : > { %829 = vrot.lane.b32.xlu1 %v577_v35, %s2853_s24  ;;  %823 = vrot.lane.b32.xlu0 %v577_v35, %s2854_s21 }
 0x100   : > { %837 = vrot.lane.b32.xlu1 %v582_v33, %s2855_s28  ;;  %835 = vrot.lane.b32.xlu0 %v577_v35, %s2855_s28 }
 0x104   : > { %679 = vrot.lane.b32.xlu1 %v3051_v37, %s2853_s24  ;;  %676 = vrot.lane.b32.xlu0 %v3051_v37, %s2854_s21 }
 0x108   : > { %682 = vrot.lane.b32.xlu0 %v3051_v37, %s2855_s28 }
 0x16a   : > { %v832_v47 = vpop.permute.xlu1 %831  ;;  %v826_v48 = vpop.permute.xlu0 %825 }
 0x16b   : > { %v909_v56 = vcombine.low %v582_v33, %v832_v47  ;;  %v910_v57 = vcombine.high %v582_v33, %v832_v47 }
 0x16d   : > { %v917_v3 = vrot.slane %v909_v56, %v3075_v55  ;;  %v924_v4 = vrot.slane %v910_v57, %v3075_v55 }
 0x16e   : > { %v830_v53 = vpop.permute.xlu1 %829  ;;  %v824_v54 = vpop.permute.xlu0 %823 }
 0x16f   : > { %v841_v59 = vcombine.low %v577_v35, %v830_v53  ;;  %v842_v60 = vcombine.high %v577_v35, %v830_v53 }
 0x171   : > { %v849_v12 = vrot.slane %v841_v59, %v3075_v55  ;;  %v856_v13 = vrot.slane %v842_v60, %v3075_v55 }
 0x172   : > { %v838_v61 = vpop.permute.xlu1 %837  ;;  %v836_v62 = vpop.permute.xlu0 %835 }
 0x173   : > { %v925_v63 = vcombine.low %v826_v48, %v838_v61  ;;  %v926_v0 = vcombine.high %v826_v48, %v838_v61  ;;  %v857_v1 = vcombine.low %v824_v54, %v836_v62  ;;  %v858_v2 = vcombine.high %v824_v54, %v836_v62 }
 0x175   : > { %v933_v7 = vrot.slane %v925_v63, %v3075_v55  ;;  %v940_v8 = vrot.slane %v926_v0, %v3075_v55  ;;  %v865_v9 = vrot.slane %v857_v1, %v3075_v55  ;;  %v872_v11 = vrot.slane %v858_v2, %v3075_v55 }
 0x176   : > { %v677_v30 = vpop.permute.xlu0 %676  ;;  %v680_v52 = vpop.permute.xlu1 %679 }
 0x177   : > { %v941_v14 = vcombine.low %v917_v3, %v933_v7  ;;  %v942_v15 = vcombine.high %v917_v3, %v933_v7  ;;  %v957_v16 = vcombine.low %v924_v4, %v940_v8  ;;  %v958_v17 = vcombine.high %v924_v4, %v940_v8 }
 0x178   : > { %v873_v18 = vcombine.low %v849_v12, %v865_v9  ;;  %v874_v19 = vcombine.high %v849_v12, %v865_v9  ;;  %v889_v20 = vcombine.low %v856_v13, %v872_v11  ;;  %v890_v21 = vcombine.high %v856_v13, %v872_v11 }
 0x179   : > { %v949_v22 = vrot.slane %v941_v14, %v3079_v6  ;;  %v956_v23 = vrot.slane %v942_v15, %v3079_v6  ;;  %v965_v24 = vrot.slane %v957_v16, %v3079_v6  ;;  %v972_v25 = vrot.slane %v958_v17, %v3079_v6 }
 0x17a   : > { %v881_v26 = vrot.slane %v873_v18, %v3079_v6  ;;  %v888_v27 = vrot.slane %v874_v19, %v3079_v6  ;;  %v897_v28 = vrot.slane %v889_v20, %v3079_v6  ;;  %v904_v29 = vrot.slane %v890_v21, %v3079_v6  ;;  %v683_v53 = vpop.permute.xlu0 %682 }
 0x17b   : > { %v1045_v31 = vcombine.low %v949_v22, %v956_v23  ;;  %v2415_v32 = vcombine.high %v949_v22, %v956_v23  ;;  %v1061_v33 = vcombine.low %v965_v24, %v972_v25  ;;  %v2416_v34 = vcombine.high %v965_v24, %v972_v25 }
 0x17c   : > { %v977_v35 = vcombine.low %v881_v26, %v888_v27  ;;  %v2413_v36 = vcombine.high %v881_v26, %v888_v27  ;;  %v993_v38 = vcombine.low %v897_v28, %v904_v29  ;;  %v2414_v39 = vcombine.high %v897_v28, %v904_v29 }
 0x17d   : > { %v1052_v40 = vrot.slane %v1045_v31, %v3075_v55  ;;  %v1060_v41 = vrot.slane %v2415_v32, %v3075_v55  ;;  %v1068_v42 = vrot.slane %v1061_v33, %v3075_v55  ;;  %v1076_v43 = vrot.slane %v2416_v34, %v3075_v55 }
 0x17e   : > { %v984_v44 = vrot.slane %v977_v35, %v3075_v55  ;;  %v992_v45 = vrot.slane %v2413_v36, %v3075_v55  ;;  %v1000_v46 = vrot.slane %v993_v38, %v3075_v55  ;;  %v1008_v47 = vrot.slane %v2414_v39, %v3075_v55 }
 0x17f   : > { %v1077_v48 = vcombine.low %v1052_v40, %v1060_v41  ;;  %v1093_v49 = vcombine.low %v1068_v42, %v1076_v43  ;;  %v685_v59 = vcombine.low %v3051_v37, %v680_v52  ;;  %v686_v60 = vcombine.high %v3051_v37, %v680_v52 }
 0x180   : > { %v1009_v50 = vcombine.low %v984_v44, %v992_v45  ;;  %v1025_v51 = vcombine.low %v1000_v46, %v1008_v47  ;;  %v701_v61 = vcombine.low %v677_v30, %v683_v53  ;;  %v702_v62 = vcombine.high %v677_v30, %v683_v53 }
 0x181   : > { %v1085_v54 = vrot.slane %v1077_v48, %v3079_v6  ;;  %v1101_v56 = vrot.slane %v1093_v49, %v3079_v6  ;;  %v693_v3 = vrot.slane %v685_v59, %v3075_v55  ;;  %v700_v4 = vrot.slane %v686_v60, %v3075_v55 }
 0x182   : > { %v1017_v57 = vrot.slane %v1009_v50, %v3079_v6  ;;  %v1033_v58 = vrot.slane %v1025_v51, %v3079_v6  ;;  %v709_v7 = vrot.slane %v701_v61, %v3075_v55  ;;  %v716_v8 = vrot.slane %v702_v62, %v3075_v55 }
 0x183   : > { %v1109_v0 = vcombine.low %v1085_v54, %v1101_v56  ;;  %v1110_v2 = vcombine.high %v1085_v54, %v1101_v56  ;;  %v1078_v37 = vcombine.high %v1052_v40, %v1060_v41  ;;  %v1094_v17 = vcombine.high %v1068_v42, %v1076_v43  ;;  %v2548_v56 = vpop.f32.mrb[2].mxu0 }
 0x184   : > { %v1041_v63 = vcombine.low %v1017_v57, %v1033_v58  ;;  %v1042_v1 = vcombine.high %v1017_v57, %v1033_v58  ;;  %v717_v13 = vcombine.low %v693_v3, %v709_v7  ;;  %v718_v14 = vcombine.high %v693_v3, %v709_v7  ;;  %v666_v57 = vpop.f32.mrb[3].mxu0 }
 0x185   : > { %v733_v15 = vcombine.low %v700_v4, %v716_v8  ;;  %v734_v16 = vcombine.high %v700_v4, %v716_v8  ;;  %v1010_v18 = vcombine.high %v984_v44, %v992_v45  ;;  %v1026_v19 = vcombine.high %v1000_v46, %v1008_v47  ;;  %v2408_v8 = vld [vmem:[%s3339_s7] ss:$0 sm:$0xff] }
 0x186   : > { %v2655_v11 = vpack.c.bf16 %v1109_v0, %v1041_v63  ;;  %v2659_v12 = vpack.c.bf16 %v1110_v2, %v1042_v1  ;;  %v725_v20 = vrot.slane %v717_v13, %v3079_v6  ;;  %v732_v21 = vrot.slane %v718_v14, %v3079_v6 }
 0x187   : > { %v741_v22 = vrot.slane %v733_v15, %v3079_v6  ;;  %v748_v23 = vrot.slane %v734_v16, %v3079_v6  ;;  %v1092_v28 = vrot.slane %v1078_v37, %v3079_v6  ;;  %v1108_v29 = vrot.slane %v1094_v17, %v3079_v6 }
 0x188   : > { %2657 = vmatpush3.bf16.xpose.msk.msra.mxu1 %vm3115_vm4, %v2655_v11  ;;  %2661 = vmatpush3.bf16.xpose.msk.msra.mxu0 %vm3115_vm4, %v2659_v12  ;;  %v753_v24 = vcombine.low %v725_v20, %v732_v21  ;;  %v2411_v25 = vcombine.high %v725_v20, %v732_v21  ;;  %v1024_v30 = vrot.slane %v1010_v18, %v3079_v6 }
 0x189   : > { %2662 = vmatprep.subr.bf16.mxu1 %v2850_v5  ;;  %2666 = vmatprep.subr.bf16.mxu0 %v2850_v5  ;;  %v769_v26 = vcombine.low %v741_v22, %v748_v23  ;;  %v2412_v27 = vcombine.high %v741_v22, %v748_v23  ;;  %v1040_v31 = vrot.slane %v1026_v19, %v3079_v6 }
 0x18a   : > { %v760_v32 = vrot.slane %v753_v24, %v3075_v55  ;;  %v768_v33 = vrot.slane %v2411_v25, %v3075_v55  ;;  %v1111_v40 = vcombine.low %v1092_v28, %v1108_v29  ;;  %v1112_v42 = vcombine.high %v1092_v28, %v1108_v29 }
 0x18b   : > { %v776_v34 = vrot.slane %v769_v26, %v3075_v55  ;;  %v784_v35 = vrot.slane %v2412_v27, %v3075_v55  ;;  %v1043_v39 = vcombine.low %v1024_v30, %v1040_v31  ;;  %v1044_v41 = vcombine.high %v1024_v30, %v1040_v31 }
 0x18c   : > { %v785_v36 = vcombine.low %v760_v32, %v768_v33  ;;  %v786_v45 = vcombine.high %v760_v32, %v768_v33  ;;  %v667_v9 = vadd.f32 %v2408_v8, %v666_v57  ;;  %v3167_v37 = vadd.f32 %v2548_v56, %v2408_v8 }
 0x18d   : > { %v801_v38 = vcombine.low %v776_v34, %v784_v35  ;;  %v802_v46 = vcombine.high %v776_v34, %v784_v35  ;;  %v2663_v49 = vpack.c.bf16 %v1111_v40, %v1043_v39  ;;  %v2667_v50 = vpack.c.bf16 %v1112_v42, %v1044_v41 }
 0x18e   : > { %v793_v43 = vrot.slane %v785_v36, %v3079_v6  ;;  %v800_v51 = vrot.slane %v786_v45, %v3079_v6 }
 0x18f   : > { %v809_v44 = vrot.slane %v801_v38, %v3079_v6  ;;  %v816_v52 = vrot.slane %v802_v46, %v3079_v6 }
 0x191   : > { %v817_v47 = vcombine.low %v793_v43, %v809_v44  ;;  %v818_v48 = vcombine.high %v793_v43, %v809_v44  ;;  %v819_v53 = vcombine.low %v800_v51, %v816_v52  ;;  %v820_v54 = vcombine.high %v800_v51, %v816_v52 }
 0x193   : > { %2554 = vmatmul.mubr.msk.f32.vlgmr.msra.gmra.mrb[2].mxu1 %vm1405_vm3, %v817_v47  ;;  %2561 = vmatmul.mubr.msk.f32.vlgmr.msra.gmra.mrb[4].mxu0 %vm1405_vm3, %v818_v48 }
 0x194   : > { %2665 = vmatpush3.bf16.xpose.msk.msra.mxu1 %vm3115_vm4, %v2663_v49  ;;  %2669 = vmatpush3.bf16.xpose.msk.msra.mxu0 %vm3115_vm4, %v2667_v50 }
 0x195   : > { %2567 = vmatprep.mubr.msk.f32.mxu1 %vm2851_vm0, %v2852_v10  ;;  %2574 = vmatprep.mubr.msk.f32.mxu0 %vm2851_vm0, %v2852_v10 }
 0x196   : > { %2670 = vmatprep.subr.bf16.mxu1 %v2850_v5  ;;  %2682 = vmatprep.subr.bf16.mxu0 %v2850_v5 }
 0x19b   : > { %2568 = vmatmul.mubr.msk.f32.vlgmr.msra.gmra.mrb[4].mxu1 %vm1405_vm3, %v819_v53  ;;  %2575 = vmatmul.mubr.msk.f32.vlgmr.msra.gmra.mrb[6].mxu0 %vm1405_vm3, %v820_v54 }
 0x19c   : > { %2581 = vmatprep.mubr.msk.f32.mxu1 %vm2851_vm0, %v2852_v10  ;;  %2613 = vmatprep.mubr.msk.f32.mxu0 %vm2851_vm0, %v2852_v10 }
 0x266   : > { %v1481_v58 = vpop.f32.mrb[2].mxu1  ;;  %v1560_v59 = vpop.f32.mrb[4].mxu0 }
 0x267   : > { %v2555_v60 = vpop.f32.mrb[3].mxu1  ;;  %v2562_v61 = vpop.f32.mrb[5].mxu0  ;;  %v1723_v62 = vsel %vm1722_vm5, %v1481_v58, -inf  ;;  %v1726_v63 = vsel %vm1722_vm5, %v1560_v59, -inf }
 0x268   : > { %1724 = vmax.xlane.f32.xlu1 %v1723_v62  ;;  %1727 = vmax.xlane.f32.xlu0 %v1726_v63 }
 0x26e   : > { %v1639_v0 = vpop.f32.mrb[4].mxu1  ;;  %v1718_v1 = vpop.f32.mrb[6].mxu0 }
 0x26f   : > { %v2569_v2 = vpop.f32.mrb[5].mxu1  ;;  %v2576_v3 = vpop.f32.mrb[7].mxu0  ;;  %v1729_v4 = vsel %vm1722_vm5, %v1639_v0, -inf  ;;  %v1732_v7 = vsel %vm1722_vm5, %v1718_v1, -inf }
 0x270   : > { %1730 = vmax.xlane.f32.xlu0 %v1729_v4  ;;  %1733 = vmax.xlane.f32.xlu1 %v1732_v7 }
 0x281   : > { %1115 = vrot.lane.b32.xlu1 %v667_v9, %s2854_s21 }
 0x285   : > { %1121 = vrot.lane.b32.xlu1 %v667_v9, %s2853_s24 }
 0x286   : > { %1117 = vrot.lane.b32.xlu0 %v3167_v37, %s2854_s21 }
 0x289   : > { %1123 = vrot.lane.b32.xlu1 %v3167_v37, %s2853_s24  ;;  %s2399_s24 = sshll.u32 %s385_s30, 3 }
 0x28a   : > { %1127 = vrot.lane.b32.xlu0 %v667_v9, %s2855_s28  ;;  %s387_s12 = scalar_lea.vmem [#allocation2], %s2399_s24  ;;  %s2774_s24 = sshll.u32 %s2861_s16, 4  ;;  %s2775_s24 = int_to_ptr.vmem [resolvable:$false] %s2774_s24 }
 0x28b   : > { %s2311_s19 = sshll.u32 %s387_s12, 4  ;;  %s2776_s21 = scalar_lea.vmem %s2775_s24, 256  ;;  %s3286_s19 = int_to_ptr.vmem [resolvable:$true] %s2311_s19 }
 0x28c   : > { %p2777_p1 = scmp.lt.s32.totalorder %s3286_s19, %s2775_s24 }
 0x28d   : > { %1129 = vrot.lane.b32.xlu1 %v3167_v37, %s2855_s28 }
 0x2f5   : > { %v1725_v11 = vpop.xlane.xlu1 %1724  ;;  %v1728_v12 = vpop.xlane.xlu0 %1727 }
 0x2f6   : > { %v1735_v13 = vsub.f32 %v1481_v58, %v1725_v11  ;;  %v1736_v14 = vsub.f32 %v1560_v59, %v1728_v12 }
 0x2f8   : > { %v1739_v15 = vmul.f32 1.442695, %v1735_v13  ;;  %v1741_v16 = vmul.f32 1.442695, %v1736_v14 }
 0x2fa   : > { %2754 = vpow2.f32 %v1739_v15 }
 0x2fb   : > { %2756 = vpow2.f32 %v1741_v16 }
 0x2fd   : > { %v1731_v17 = vpop.xlane.xlu0 %1730  ;;  %v1734_v18 = vpop.xlane.xlu1 %1733 }
 0x2fe   : > { %v1737_v19 = vsub.f32 %v1639_v0, %v1731_v17  ;;  %v1738_v20 = vsub.f32 %v1718_v1, %v1734_v18 }
 0x300   : > { %v1743_v21 = vmul.f32 1.442695, %v1737_v19  ;;  %v1745_v22 = vmul.f32 1.442695, %v1738_v20 }
 0x301   : > { %v1118_v23 = vpop.permute.xlu0 %1117  ;;  %v1116_v24 = vpop.permute.xlu1 %1115 }
 0x302   : > { %2758 = vpow2.f32 %v1743_v21 }
 0x303   : > { %2760 = vpow2.f32 %v1745_v22 }
 0x304   : > { %v3177_v25 = vpop.eup %2754 }
 0x305   : > { %v1128_v26 = vpop.permute.xlu0 %1127  ;;  %v1122_v27 = vpop.permute.xlu1 %1121  ;;  %v1747_v28 = vsel %vm1722_vm5, %v3177_v25, 0.0 }
 0x306   : > { %v3181_v29 = vpop.eup %2756  ;;  %v1149_v30 = vcombine.low %v1116_v24, %v1128_v26  ;;  %v1150_v31 = vcombine.high %v1116_v24, %v1128_v26  ;;  %v1133_v32 = vcombine.low %v667_v9, %v1122_v27  ;;  %v1134_v33 = vcombine.high %v667_v9, %v1122_v27  ;;  %1748 = vadd.xlane.f32.xlu0 %v1747_v28 }
 0x307   : > { %v1750_v40 = vsel %vm1722_vm5, %v3181_v29, 0.0 }
 0x308   : > { %v1157_v34 = vrot.slane %v1149_v30, %v3075_v55  ;;  %v1164_v35 = vrot.slane %v1150_v31, %v3075_v55  ;;  %v1141_v36 = vrot.slane %v1133_v32, %v3075_v55  ;;  %v1148_v38 = vrot.slane %v1134_v33, %v3075_v55 }
 0x309   : > { %v1124_v39 = vpop.permute.xlu1 %1123 }
 0x30a   : > { %v1165_v41 = vcombine.low %v1141_v36, %v1157_v34  ;;  %v1166_v42 = vcombine.high %v1141_v36, %v1157_v34  ;;  %v1181_v43 = vcombine.low %v1148_v38, %v1164_v35  ;;  %v1182_v44 = vcombine.high %v1148_v38, %v1164_v35  ;;  %1751 = vadd.xlane.f32.xlu0 %v1750_v40 }
 0x30b   : > { %v1201_v51 = vcombine.low %v3167_v37, %v1124_v39  ;;  %v1202_v52 = vcombine.high %v3167_v37, %v1124_v39 }
 0x30c   : > { %v3189_v45 = vpop.eup %2758  ;;  %v1173_v46 = vrot.slane %v1165_v41, %v3079_v6  ;;  %v1180_v47 = vrot.slane %v1166_v42, %v3079_v6  ;;  %v1189_v48 = vrot.slane %v1181_v43, %v3079_v6  ;;  %v1196_v49 = vrot.slane %v1182_v44, %v3079_v6 }
 0x30d   : > { %v3195_v50 = vpop.eup %2760  ;;  %v1130_v53 = vpop.permute.xlu1 %1129  ;;  %v1753_v54 = vsel %vm1722_vm5, %v3189_v45, 0.0  ;;  %v1209_v3 = vrot.slane %v1201_v51, %v3075_v55  ;;  %v1216_v4 = vrot.slane %v1202_v52, %v3075_v55 }
 0x30e   : > { %v1269_v56 = vcombine.low %v1173_v46, %v1180_v47  ;;  %v2417_v57 = vcombine.high %v1173_v46, %v1180_v47  ;;  %v1285_v58 = vcombine.low %v1189_v48, %v1196_v49  ;;  %v2418_v59 = vcombine.high %v1189_v48, %v1196_v49  ;;  %1754 = vadd.xlane.f32.xlu1 %v1753_v54 }
 0x30f   : > { %v1217_v60 = vcombine.low %v1118_v23, %v1130_v53  ;;  %v1218_v61 = vcombine.high %v1118_v23, %v1130_v53  ;;  %v1756_v62 = vsel %vm1722_vm5, %v3195_v50, 0.0 }
 0x310   : > { %v1276_v63 = vrot.slane %v1269_v56, %v3075_v55  ;;  %v1284_v0 = vrot.slane %v2417_v57, %v3075_v55  ;;  %v1292_v1 = vrot.slane %v1285_v58, %v3075_v55  ;;  %v1300_v2 = vrot.slane %v2418_v59, %v3075_v55  ;;  %1757 = vadd.xlane.f32.xlu0 %v1756_v62 }
 0x311   : > { %v1225_v7 = vrot.slane %v1217_v60, %v3075_v55  ;;  %v1232_v8 = vrot.slane %v1218_v61, %v3075_v55 }
 0x312   : > { %v1301_v9 = vcombine.low %v1276_v63, %v1284_v0  ;;  %v1317_v37 = vcombine.low %v1292_v1, %v1300_v2  ;;  %v1302_v11 = vcombine.high %v1276_v63, %v1284_v0  ;;  %v1318_v12 = vcombine.high %v1292_v1, %v1300_v2 }
 0x313   : > { %v1233_v13 = vcombine.low %v1209_v3, %v1225_v7  ;;  %v1234_v14 = vcombine.high %v1209_v3, %v1225_v7  ;;  %v1249_v15 = vcombine.low %v1216_v4, %v1232_v8  ;;  %v1250_v16 = vcombine.high %v1216_v4, %v1232_v8  ;;  %v2211_v7 = vld [vmem:[%s3340_s8] sm:$0xff] }
 0x314   : > { %v1309_v17 = vrot.slane %v1301_v9, %v3079_v6  ;;  %v1325_v18 = vrot.slane %v1317_v37, %v3079_v6  ;;  %v1316_v19 = vrot.slane %v1302_v11, %v3079_v6  ;;  %v1332_v20 = vrot.slane %v1318_v12, %v3079_v6 }
 0x315   : > { %v1241_v21 = vrot.slane %v1233_v13, %v3079_v6  ;;  %v1248_v22 = vrot.slane %v1234_v14, %v3079_v6  ;;  %v1257_v23 = vrot.slane %v1249_v15, %v3079_v6  ;;  %v1264_v24 = vrot.slane %v1250_v16, %v3079_v6 }
 0x316   : > { %v1334_v26 = vcombine.high %v1309_v17, %v1325_v18  ;;  %v1335_v27 = vcombine.low %v1316_v19, %v1332_v20  ;;  %v1336_v28 = vcombine.high %v1316_v19, %v1332_v20  ;;  %v1333_v48 = vcombine.low %v1309_v17, %v1325_v18 }
 0x317   : > { %v1337_v30 = vcombine.low %v1241_v21, %v1248_v22  ;;  %v2419_v31 = vcombine.high %v1241_v21, %v1248_v22  ;;  %v1353_v32 = vcombine.low %v1257_v23, %v1264_v24  ;;  %v2420_v33 = vcombine.high %v1257_v23, %v1264_v24 }
 0x319   : > { %v1344_v34 = vrot.slane %v1337_v30, %v3075_v55  ;;  %v1352_v35 = vrot.slane %v2419_v31, %v3075_v55  ;;  %v1360_v36 = vrot.slane %v1353_v32, %v3075_v55  ;;  %v1368_v38 = vrot.slane %v2420_v33, %v3075_v55 }
 0x31b   : > { %v1369_v39 = vcombine.low %v1344_v34, %v1352_v35  ;;  %v1385_v40 = vcombine.low %v1360_v36, %v1368_v38  ;;  %v1370_v41 = vcombine.high %v1344_v34, %v1352_v35  ;;  %v1386_v42 = vcombine.high %v1360_v36, %v1368_v38 }
 0x31d   : > { %v1377_v43 = vrot.slane %v1369_v39, %v3079_v6  ;;  %v1393_v44 = vrot.slane %v1385_v40, %v3079_v6  ;;  %v1384_v46 = vrot.slane %v1370_v41, %v3079_v6  ;;  %v1400_v47 = vrot.slane %v1386_v42, %v3079_v6 }
 0x31f   : > { %v1401_v49 = vcombine.low %v1377_v43, %v1393_v44  ;;  %v1402_v51 = vcombine.high %v1377_v43, %v1393_v44  ;;  %v1403_v52 = vcombine.low %v1384_v46, %v1400_v47  ;;  %v1404_v53 = vcombine.high %v1384_v46, %v1400_v47 }
 0x321   : > { %v2671_v54 = vpack.c.bf16 %v1401_v49, %v1333_v48  ;;  %v2674_v56 = vpack.c.bf16 %v1402_v51, %v1334_v26  ;;  %v2677_v57 = vpack.c.bf16 %v1403_v52, %v1335_v27  ;;  %v2680_v58 = vpack.c.bf16 %v1404_v53, %v1336_v28  ;;  %v2213_v27 = vld [vmem:[%s3340_s8 + $0x10] sm:$0xff]  ;;  %v2214_v28 = vld [vmem:[%s3340_s8 + $0x18] sm:$0xff] }
 0x322   : > { %v2686_v34 = vpack.c.bf16 %v2214_v28, %v2213_v27 }
 0x323   : > { %2672 = vmatpush3.bf16.msra.mxu1 %v2671_v54 }
 0x324   : > { %2673 = vmatprep.subr.bf16.mxu1 %v2850_v5 }
 0x393   : > { %v1749_v59 = vpop.xlane.xlu0 %1748 }
 0x394   : > { %2762 = vrcp.f32 %v1749_v59 }
 0x397   : > { %v1752_v60 = vpop.xlane.xlu0 %1751 }
 0x398   : > { %2764 = vrcp.f32 %v1752_v60 }
 0x39b   : > { %v1755_v61 = vpop.xlane.xlu1 %1754 }
 0x39c   : > { %2766 = vrcp.f32 %v1755_v61 }
 0x39d   : > { %v1758_v62 = vpop.xlane.xlu0 %1757 }
 0x39e   : > { %v2763_v63 = vpop.eup %2762  ;;  %2768 = vrcp.f32 %v1758_v62 }
 0x39f   : > { %v1760_v0 = vmul.f32 %v2763_v63, %v3177_v25  ;;  %v2439_v63 = vld [vmem:[%s3341_s9] ss:$0 sm:$0xff] }
 0x3a1   : > { %2582 = vmatmul.mubr.msk.f32.vlgmr.msra.gmra.mrb[6].mxu1 %vm1722_vm5, %v1760_v0 }
 0x3a2   : > { %v2765_v1 = vpop.eup %2764  ;;  %2675 = vmatpush3.bf16.msra.mxu1 %v2674_v56  ;;  %2588 = vmatprep.mubr.msk.f32.mxu1 %vm2851_vm0, %v2852_v10 }
 0x3a3   : > { %v1762_v2 = vmul.f32 %v2765_v1, %v3181_v29  ;;  %2676 = vmatprep.subr.bf16.mxu1 %v2850_v5 }
 0x3a5   : > { %2589 = vmatmul.mubr.msk.f32.vlgmr.msra.gmra.mrb[8].mxu1 %vm1722_vm5, %v1762_v2 }
 0x3a6   : > { %v2767_v3 = vpop.eup %2766  ;;  %2678 = vmatpush3.bf16.msra.mxu1 %v2677_v57  ;;  %2595 = vmatprep.mubr.msk.f32.mxu1 %vm2851_vm0, %v2852_v10 }
 0x3a7   : > { %v1764_v25 = vmul.f32 %v2767_v3, %v3189_v45  ;;  %2679 = vmatprep.subr.bf16.mxu1 %v2850_v5  ;;  %v2212_v45 = vld [vmem:[%s3340_s8 + $0x8] sm:$0xff] }
 0x3a8   : > { %v2769_v4 = vpop.eup %2768  ;;  %v2683_v8 = vpack.c.bf16 %v2212_v45, %v2211_v7 }
 0x3a9   : > { %2596 = vmatmul.mubr.msk.f32.vlgmr.msra.gmra.mrb[10].mxu1 %vm1722_vm5, %v1764_v25  ;;  %v1766_v29 = vmul.f32 %v2769_v4, %v3195_v50 }
 0x3aa   : > { %2681 = vmatpush3.bf16.msra.mxu1 %v2680_v58  ;;  %2602 = vmatprep.mubr.msk.f32.mxu1 %vm2851_vm0, %v2852_v10 }
 0x3ab   : > { %2684 = vmatpush3.bf16.msra.mxu0 %v2683_v8 }
 0x3ac   : > { %2685 = vmatprep.subr.bf16.mxu0 %v2850_v5 }
 0x3ad   : > { %2603 = vmatmul.mubr.msk.f32.vlgmr.msra.gmra.mrb[12].mxu1 %vm1722_vm5, %v1766_v29 }
 0x3af   : > { %2687 = vmatpush3.bf16.msra.mxu0 %v2686_v34 }
 0x474   : > { %v1836_v9 = vpop.f32.mrb[6].mxu1 }
 0x475   : > { %v2583_v37 = vpop.f32.mrb[7].mxu1 }
 0x478   : > { %v1909_v11 = vpop.f32.mrb[8].mxu1 }
 0x479   : > { %v2590_v10 = vpop.f32.mrb[9].mxu1 }
 0x47c   : > { %v1982_v12 = vpop.f32.mrb[10].mxu1 }
 0x47d   : > { %v2059_v50 = vcombine.low %v1836_v9, %v1982_v12  ;;  %v2060_v13 = vcombine.high %v1836_v9, %v1982_v12  ;;  %v2597_v14 = vpop.f32.mrb[11].mxu1 }
 0x47f   : > { %v2067_v19 = vrot.slane %v2059_v50, %v3075_v55  ;;  %v2074_v20 = vrot.slane %v2060_v13, %v3075_v55 }
 0x480   : > { %v2055_v15 = vpop.f32.mrb[12].mxu1 }
 0x481   : > { %v2075_v16 = vcombine.low %v1909_v11, %v2055_v15  ;;  %v2076_v17 = vcombine.high %v1909_v11, %v2055_v15  ;;  %v2604_v18 = vpop.f32.mrb[13].mxu1 }
 0x483   : > { %v2083_v21 = vrot.slane %v2075_v16, %v3075_v55  ;;  %v2090_v5 = vrot.slane %v2076_v17, %v3075_v55 }
 0x485   : > { %v2091_v22 = vcombine.low %v2067_v19, %v2083_v21  ;;  %v2092_v23 = vcombine.high %v2067_v19, %v2083_v21  ;;  %v2107_v24 = vcombine.low %v2074_v20, %v2090_v5  ;;  %v2108_v26 = vcombine.high %v2074_v20, %v2090_v5 }
 0x487   : > { %v2099_v30 = vrot.slane %v2091_v22, %v3079_v6  ;;  %v2106_v31 = vrot.slane %v2092_v23, %v3079_v6  ;;  %v2115_v32 = vrot.slane %v2107_v24, %v3079_v6  ;;  %v2122_v33 = vrot.slane %v2108_v26, %v3079_v6 }
 0x489   : > { %v2127_v35 = vcombine.low %v2099_v30, %v2106_v31  ;;  %v2437_v36 = vcombine.high %v2099_v30, %v2106_v31  ;;  %v2143_v38 = vcombine.low %v2115_v32, %v2122_v33  ;;  %v2438_v39 = vcombine.high %v2115_v32, %v2122_v33 }
 0x48b   : > { %v2134_v40 = vrot.slane %v2127_v35, %v3075_v55  ;;  %v2142_v41 = vrot.slane %v2437_v36, %v3075_v55  ;;  %v2150_v42 = vrot.slane %v2143_v38, %v3075_v55  ;;  %v2158_v43 = vrot.slane %v2438_v39, %v3075_v55 }
 0x48d   : > { %v2160_v44 = vcombine.high %v2134_v40, %v2142_v41  ;;  %v2176_v46 = vcombine.high %v2150_v42, %v2158_v43  ;;  %v2159_v47 = vcombine.low %v2134_v40, %v2142_v41  ;;  %v2175_v48 = vcombine.low %v2150_v42, %v2158_v43 }
 0x48f   : > { %v2174_v49 = vrot.slane %v2160_v44, %v3079_v6  ;;  %v2190_v51 = vrot.slane %v2176_v46, %v3079_v6  ;;  %v2167_v52 = vrot.slane %v2159_v47, %v3079_v6  ;;  %v2183_v53 = vrot.slane %v2175_v48, %v3079_v6 }
 0x491   : > { %v2193_v54 = vcombine.low %v2174_v49, %v2190_v51  ;;  %v2192_v56 = vcombine.high %v2167_v52, %v2183_v53  ;;  %v2194_v57 = vcombine.high %v2174_v49, %v2190_v51  ;;  %v2191_v58 = vcombine.low %v2167_v52, %v2183_v53 }
 0x493   : > { %2200 = vrot.lane.b32.xlu1 %v2193_v54, %s2858_s29  ;;  %2196 = vrot.lane.b32.xlu0 %v2192_v56, %s2859_s17  ;;  %s3284_s29 = scalar_lea.hbm %s3342_s10, %s2442_s11  ;;  %s2297_s17 = scalar_lea.sflag [#allocation3], %s385_s30 }
 0x497   : > { %2204 = vrot.lane.b32.xlu1 %v2194_v57, %s2860_s27  ;;  %s2770_s27 = scalar_lea.vmem %s3286_s19, 128 }
 0x498   : > { %p2771_p12 = scmp.ne.s32.totalorder %s3286_s19, %s2770_s27  ;;  %p2778_p2 = scmp.lt.s32.totalorder %s2776_s21, %s2770_s27 }
 0x49a   : > { %p2772_p13 = pnand %p2771_p12, %p2957_p4  ;;  %p2779_p3 = por %p2778_p2, %p2777_p1 }
 0x49c   : > { %p2773_p0 = pneg %p2772_p13 }
 0x49e   : > { %p2780_p5 = pnand %p2779_p3, %p2773_p0 }
 0x505   : > { %v2201_v55 = vpop.permute.xlu1 %2200  ;;  %v2197_v59 = vpop.permute.xlu0 %2196 }
 0x506   : > { %v2207_v60 = vsel %vm1405_vm3, %v2191_v58, %v2197_v59 }
 0x507   : > { %v2208_v6 = vsel %vm1722_vm5, %v2207_v60, %v2201_v55 }
 0x509   : > { %v2205_v61 = vpop.permute.xlu1 %2204 }
 0x50a   : > { %v2210_v62 = vsel %vm2209_vm6, %v2208_v6, %v2205_v61 }
 0x50b   : > { %2614 = vmatmul.mubr.msk.f32.vlgmr.msra.gmra.mrb[8].mxu0 %vm414_vm2, %v2210_v62 }
 0x5de   : > { %v2291_v0 = vpop.f32.mrb[8].mxu0 }
 0x5df   : > { %v2292_v1 = vadd.f32 %v2439_v63, %v2291_v0  ;;  %v2615_v2 = vpop.f32.mrb[9].mxu0 }
 0x5e1   : > { %2295 = vst.msk [vmem:[%s387_s12] sm:$0xff] %vm414_vm2, %v2292_v1 }
 0x5e2   : > { %2783 = shalt.err (!%p2780_p5)
}
 0x5e3   : > { %s2784_s30 = scalar_lea.hbm %s3284_s29, 128  ;;  %s2788_s12 = scalar_lea.hbm %s3342_s10, 256 }
 0x5e4   : > { %p2785_p6 = scmp.ne.s32.totalorder %s3284_s29, %s2784_s30  ;;  %p2789_p10 = scmp.lt.u32.totalorder %s3284_s29, %s3342_s10 }
 0x5e5   : > { %p2790_p11 = scmp.lt.u32.totalorder %s2788_s12, %s2784_s30  ;;  %p2792_p13 = scmp.lt.u32.totalorder %s2784_s30, %s3284_s29 }
 0x5e6   : > { %p2786_p7 = pnand %p2785_p6, %p2957_p4 }
 0x5e7   : > { %p2791_p12 = por %p2790_p11, %p2789_p10 }
 0x5e8   : > { %p2787_p9 = pneg %p2786_p7 }
 0x5e9   : > { %p2793_p0 = por %p2792_p13, %p2791_p12 }
 0x5eb   : > { %p2794_p1 = pnand %p2793_p0, %p2787_p9 }
 0x5ed   : > { %2797 = shalt.err (!%p2794_p1)
}
 0x5ee   : > { %2688 = dma.vmem_to_hbm [thread:$0]  (%p2957_p4), %s3286_s19, 128, %s3284_s29, %s2297_s17  }
 0x5ef PF: > { %p2694_p2 = scmp.ge.s32.totalorder %s2848_s18, 2  ;;  %s2323_s27 = sand.u32 1, %s2828_s13  }
 0x5f0   : > { %s2324_s16 = scalar_lea.sflag [#allocation3], %s2323_s27 }
 0x5f1   : > { %p2691_p3 = pnand %p2694_p2, %p2964_p8 }
 0x5f3   : > { %2823 = dma.done.wait (!%p2691_p3), %s2324_s16, 128  }
 0x5f4   : > { %2825 = vsyncadd (!%p2691_p3), %s2324_s16, 4294967168  ;;  %s23_s18 = sadd.s32 1, %s2848_s18   ;;  %s3351_s16 = sld [smem:[#allocation5_spill]] }
 0x5f5   : > { %p20_p5 = scmp.ge.s32.totalorder %s23_s18, 4   ;;  %s3352_s17 = sld [smem:[#allocation6_spill]] }
 0x5f6   : > { %s3353_s13 = smov %s2832_s14  ;;  %s3354_s14 = smov %s2836_s15 }
 0x5f7   : > { %s3355_s15 = smov %s2970_s26  ;;  %22 = sbr.rel (!%p20_p5) target bundleno = 4 (0x4), region = 98 }
 0x5fe   :  { %2329 = vsyncpa [#allocation3], 1 }
 0x5ff   :  { %2331 = vsyncpa [#allocation3 + $0x1], 1 }

</bundles_post_ra>
